<compile_context>
chip_gen: v7x
topology: tpu7x:2x2x1
jax: 0.10.0
libtpu: 0.0.40
codegen_flags: <defaults>
</compile_context>

<pallas_src>
from functools import partial

import jax
import jax.numpy as jnp
from jax.experimental import pallas as pl
from jax.experimental.pallas import tpu as pltpu


def salhead_kernel(x_ref, w_ref, b_ref, o_ref, *, use_mxu):
    # x_ref: (1, C, THW)  spatial tile of one batch element's feature map (VMEM)
    # w_ref: (1, C) if use_mxu else (C, 1)  1x1 conv weight (VMEM)
    # b_ref: (1, 1)  conv bias (SMEM scalar)
    # o_ref: (1, 1, THW)  output saliency tile
    x = x_ref[0]                                   # (C, THW)
    bias = b_ref[0, 0].astype(jnp.float32)

    if use_mxu:
        # (1, C) x (C, THW) on the MXU, f32 accumulate.
        y = jnp.dot(w_ref[...], x, preferred_element_type=jnp.float32)   # (1, THW)
    else:
        # Small C: VPU weighted sum, avoids MXU push/pop latency for a 1-row matmul.
        w = w_ref[...].astype(jnp.float32)                               # (C, 1)
        y = jnp.sum(w * x.astype(jnp.float32), axis=0, keepdims=True)    # (1, THW)

    y = y + bias
    o_ref[0] = jax.nn.sigmoid(y).astype(o_ref.dtype)


def salhead_forward(x_nchw, weight, bias):
    """x_nchw: (N, C, H, W); weight: (1, C, 1, 1); bias: (1,) -> (N, 1, H, W)."""
    N, C, H, W = x_nchw.shape
    HW = H * W
    LANE = 128

    x = x_nchw.reshape(N, C, HW)

    use_mxu = C > 16
    if use_mxu:
        w = weight.reshape(1, C).astype(x.dtype)   # keep x dtype (bf16 stays bf16)
    else:
        w = weight.reshape(C, 1).astype(x.dtype)
    b = bias.reshape(1, 1).astype(jnp.float32)

    # Spatial tile size: large multiple of 128, but keep the per-block x footprint
    # <= ~4 MiB so double-buffering (~8 MiB) fits comfortably under v7x's 64 MiB VMEM
    # and v5e's 16 MiB default scoped-VMEM limit.
    itemsize = jnp.dtype(x.dtype).itemsize
    budget_bytes = 4 * 1024 * 1024
    max_thw = max(LANE, (budget_bytes // max(1, C * itemsize)) // LANE * LANE)
    THW = min(8192, max_thw)
    hw_pad_to_lane = pl.cdiv(HW, LANE) * LANE
    if hw_pad_to_lane < THW:
        THW = hw_pad_to_lane

    HW_pad = pl.cdiv(HW, THW) * THW
    if HW_pad != HW:
        x = jnp.pad(x, ((0, 0), (0, 0), (0, HW_pad - HW)))
    num_spatial = HW_pad // THW

    out = pl.pallas_call(
        partial(salhead_kernel, use_mxu=use_mxu),
        out_shape=jax.ShapeDtypeStruct((N, 1, HW_pad), x.dtype),
        grid_spec=pltpu.PrefetchScalarGridSpec(
            num_scalar_prefetch=0,
            grid=(N, num_spatial),
            in_specs=[
                pl.BlockSpec((1, C, THW), lambda n, s: (n, 0, s)),   # spatial tile
                pl.BlockSpec(w.shape, lambda n, s: (0, 0)),          # shared conv weight
                pl.BlockSpec(memory_space=pltpu.MemorySpace.SMEM),   # scalar bias in SMEM
            ],
            out_specs=pl.BlockSpec((1, 1, THW), lambda n, s: (n, 0, s)),
        ),
        compiler_params=pltpu.CompilerParams(
            dimension_semantics=("parallel", "parallel"),
        ),
    )(x, w, b)

    return out[:, :, :HW].reshape(N, 1, H, W)


def reference_forward(x_nchw, weight, bias):
    # Pure-JAX reference: eval-mode Dropout2d is identity; 1x1 conv + sigmoid.
    N, C, H, W = x_nchw.shape
    w = weight.reshape(1, C)
    y = jnp.einsum("oc,nchw->nohw", w, x_nchw) + bias.reshape(1, 1, 1, 1)
    return jax.nn.sigmoid(y)


if __name__ == "__main__":
    key = jax.random.PRNGKey(0)
    k_x, k_w, k_b = jax.random.split(key, 3)

    N, C, H, W = 2, 4, 16, 16  # small shapes; in_channel = C
    x = jax.random.normal(k_x, (N, C, H, W), dtype=jnp.float32)

    # Deterministic parameter init mimicking PyTorch Conv2d default (kaiming-uniform-ish bound)
    fan_in = C * 1 * 1
    bound = 1.0 / (fan_in ** 0.5)
    weight = jax.random.uniform(k_w, (1, C, 1, 1), minval=-bound, maxval=bound, dtype=jnp.float32)
    bias = jax.random.uniform(k_b, (1,), minval=-bound, maxval=bound, dtype=jnp.float32)

    out = salhead_forward(x, weight, bias)
    out = jax.block_until_ready(out)

    ref = reference_forward(x, weight, bias)
    assert out.shape == (N, 1, H, W), out.shape
    assert jnp.allclose(out, ref, atol=1e-5, rtol=1e-5), "mismatch vs reference"

    print("KERNEL_OK")
</pallas_src>

<mosaic_0001>
module attributes {stable_mosaic.version = 11 : i64} {
  func.func @salhead_kernel(%arg0: i32, %arg1: i32, %arg2: memref<1x4x256xf32, #tpu.memory_space<vmem>>, %arg3: memref<4x1xf32, #tpu.memory_space<vmem>>, %arg4: memref<1x1xf32, #tpu.memory_space<smem>>, %arg5: memref<1x1x256xf32, #tpu.memory_space<vmem>>) attributes {dimension_semantics = [#tpu.dimension_semantics<parallel>, #tpu.dimension_semantics<parallel>], iteration_bounds = array<i64: 2, 1>, scalar_prefetch = 0 : i64, scratch_operands = 0 : i64, tpu.core_type = #tpu.core_type<tc>, window_params = [{transform_indices = @transform_0, window_bounds = array<i64: 1, 4, 256>}, {pipeline_mode = #tpu.pipeline_mode<synchronous>, transform_indices = @transform_1, window_bounds = array<i64: 4, 1>}, {transform_indices = @transform_2, window_bounds = array<i64: 1, 1>}, {transform_indices = @transform_3, window_bounds = array<i64: 1, 1, 256>}]} {
    %c0 = arith.constant 0 : index
    %c0_0 = arith.constant 0 : index
    %c0_1 = arith.constant 0 : index
    %0 = vector.load %arg2[%c0, %c0_0, %c0_1] : memref<1x4x256xf32, #tpu.memory_space<vmem>>, vector<1x4x256xf32>
    %1 = vector.shape_cast %0 : vector<1x4x256xf32> to vector<4x256xf32>
    %c0_2 = arith.constant 0 : index
    %c0_3 = arith.constant 0 : index
    %2 = memref.load %arg4[%c0_2, %c0_3] : memref<1x1xf32, #tpu.memory_space<smem>>
    %c0_4 = arith.constant 0 : index
    %c0_5 = arith.constant 0 : index
    %3 = vector.load %arg3[%c0_4, %c0_5] : memref<4x1xf32, #tpu.memory_space<vmem>>, vector<4x1xf32>
    %4 = vector.broadcast %3 : vector<4x1xf32> to vector<4x256xf32>
    %5 = arith.mulf %4, %1 : vector<4x256xf32>
    %cst = arith.constant dense<0.000000e+00> : vector<256xf32>
    %6 = vector.multi_reduction <add>, %5, %cst [0] : vector<4x256xf32> to vector<256xf32>
    %7 = vector.shape_cast %6 : vector<256xf32> to vector<1x256xf32>
    %8 = vector.broadcast %2 : f32 to vector<1x256xf32>
    %9 = arith.addf %7, %8 : vector<1x256xf32>
    %10 = arith.negf %9 : vector<1x256xf32>
    %11 = math.exp %10 : vector<1x256xf32>
    %cst_6 = arith.constant 1.000000e+00 : f32
    %12 = vector.broadcast %cst_6 : f32 to vector<1x256xf32>
    %13 = arith.addf %12, %11 : vector<1x256xf32>
    %14 = arith.divf %12, %13 : vector<1x256xf32>
    %c0_7 = arith.constant 0 : index
    %c0_8 = arith.constant 0 : index
    %c0_9 = arith.constant 0 : index
    %15 = vector.load %arg5[%c0_7, %c0_8, %c0_9] : memref<1x1x256xf32, #tpu.memory_space<vmem>>, vector<1x1x256xf32>
    %16 = vector.shape_cast %15 : vector<1x1x256xf32> to vector<1x256xf32>
    %17 = vector.shape_cast %14 : vector<1x256xf32> to vector<1x1x256xf32>
    tpu.vector_store %arg5[%c0_7, %c0_8, %c0_9], %17 {strides = array<i32>} : memref<1x1x256xf32, #tpu.memory_space<vmem>>, vector<1x1x256xf32>,
    return
  }
  func.func @transform_0(%arg0: i32, %arg1: i32) -> (i32, i32, i32) {
    %c0_i32 = arith.constant 0 : i32
    %c0_i32_0 = arith.constant 0 : i32
    return %arg0, %c0_i32, %arg1 : i32, i32, i32
  }
  func.func @transform_1(%arg0: i32, %arg1: i32) -> (i32, i32) {
    %c0_i32 = arith.constant 0 : i32
    %c0_i32_0 = arith.constant 0 : i32
    %c0_i32_1 = arith.constant 0 : i32
    return %c0_i32, %c0_i32_0 : i32, i32
  }
  func.func @transform_2(%arg0: i32, %arg1: i32) -> (i32, i32) {
    %c0_i32 = arith.constant 0 : i32
    %c0_i32_0 = arith.constant 0 : i32
    %c0_i32_1 = arith.constant 0 : i32
    return %c0_i32, %c0_i32_0 : i32, i32
  }
  func.func @transform_3(%arg0: i32, %arg1: i32) -> (i32, i32, i32) {
    %c0_i32 = arith.constant 0 : i32
    %c0_i32_0 = arith.constant 0 : i32
    return %arg0, %c0_i32, %arg1 : i32, i32, i32
  }
}

</mosaic_0001>

<bundles_post_ra>
// kernel: tpu_custom_call.1
= control target key start
LH: loop header
LB: loop body
LE: loop exit
PB: predicated region body
PF: predicated region fallthrough
CT: control target
= control target key end

     0   :  { %s785_s0 = inlined_call_operand.hbm [shape: f32[2,4,256], index: 0, kind: input, shape index: {}]   ;;  %s786_s1 = inlined_call_operand.vmem [shape: f32[4,1], index: 1, kind: input, shape index: {}]   ;;  %s787_s2 = inlined_call_operand.<no memory space> [shape: f32[1,1], index: 2, kind: input, shape index: {}]   ;;  %s788_s3 = inlined_call_operand.hbm [shape: f32[2,1,256], index: 3, kind: output, shape index: {}]  }
   0x1   :  { %8 = sst [smem:[#allocation2]] %s787_s2 }
   0x2   :  { %9 = vsyncpa [#allocation4], 0 }
   0x3   :  { %11 = vsyncpa [#allocation4 + $0x1], 0 }
   0x4   :  { %12 = vsyncpa [#allocation5], 0 }
   0x5   :  { %14 = vsyncpa [#allocation5 + $0x1], 0  ;;  %s609_s14 = smov 0   ;;  %s611_s15 = smov 0  }
   0x6   :  { %s613_s16 = smov 0   ;;  %s615_s17 = smov 0  }
   0x7   :  { %s617_s18 = smov 0   ;;  %s619_s19 = smov 0  }
   0x8 LB: > { %s375_s2 = sadd.s32 4294967295, %s580_s19   ;;  %s376_s20 = sadd.s32 4294967294, %s580_s19   ;;  %s580_s19 = sphi %s619_s19, %s20_s19   ;;  %s576_s18 = sphi %s617_s18, %s804_s18   ;;  %s572_s17 = sphi %s615_s17, %s803_s17   ;;  %s568_s16 = sphi %s613_s16, %s802_s16   ;;  %s564_s15 = sphi %s611_s15, %s801_s15   ;;  %s560_s14 = sphi %s609_s14, %s800_s14  }
   0x9   : > { %s32_s21 = sadd.s32 1, %s576_s18  ;;  %s41_s22 = sadd.s32 1, %s568_s16 }
   0xa   : > { %p34_p0 = scmp.ge.s32.totalorder %s32_s21, 2  ;;  %p48_p1 = scmp.ne.s32.totalorder %s568_s16, %s564_s15 }
   0xb   : > { %p49_p2 = scmp.eq.s32.totalorder %s580_s19, 0  ;;  %p54_p3 = scmp.ne.s32.totalorder %s564_s15, %s560_s14 }
   0xc   : > { %s806_s21 = smov (%p34_p0, %s32_s21), 0  ;;  %p55_p5 = scmp.eq.s32.totalorder %s375_s2, 0 }
   0xd   : > { %p650_p4 = por %p49_p2, %p48_p1  ;;  %s36_s24 = ssub.s32 %s576_s18, %s806_s21 }
   0xe   : > { %p122_p6 = scmp.eq.s32.totalorder %s375_s2, 1  ;;  %p39_p7 = scmp.eq.s32.totalorder %s36_s24, 0 }
   0xf   : > { %p656_p8 = por %p55_p5, %p54_p3  ;;  %p128_p10 = scmp.eq.s32.totalorder %s376_s20, 1 }
  0x10   : > { %p660_p9 = por %p122_p6, %p48_p1  ;;  %p406_p13 = scmp.lt.s32.totalorder %s580_s19, 2 }
  0x11   : > { %s665_s27 = scalar_select %p39_p7, %s568_s16, %s41_s22  }
  0x12   : > { %s792_s26 = scalar_select %p660_p9, 1, 0 }
  0x13   : > { %p667_p11 = por %p128_p10, %p54_p3  ;;  %s154_s29 = sand.u32 1, %s568_s16  }
  0x14   : > { %s379_s30 = sshll.u32 %s154_s29, 3  ;;  %s392_s4 = sshll.u32 %s576_s18, 7 }
  0x15   : > { %s793_s28 = scalar_select %p667_p11, 1, 0 }
  0x16   : > { %s678_s7 = scalar_lea.hbm %s785_s0, %s392_s4  ;;  %s158_s8 = scalar_lea.vmem [#allocation3], %s379_s30 }
  0x17   : > { %s168_s9 = sshll.u32 %s158_s8, 4  ;;  %p684_p0 = pnand %p406_p13, %p650_p4  ;;  %s680_s9 = int_to_ptr.vmem [resolvable:$true] %s168_s9 }
  0x18   : > { %s155_s11 = scalar_lea.sflag [#allocation4], %s154_s29  ;;  %s468_s12 = scalar_lea.hbm %s678_s7, 128 }
  0x19   : > { %p469_p3 = scmp.ne.s32.totalorder %s678_s7, %s468_s12  ;;  %p470_p5 = pneg %p684_p0 }
  0x1a   : > { %s473_s20 = scalar_lea.hbm %s785_s0, 256  ;;  %p474_p4 = scmp.lt.u32.totalorder %s678_s7, %s785_s0 }
  0x1b   : > { %p471_p6 = pnand %p470_p5, %p469_p3  ;;  %p475_p10 = scmp.lt.u32.totalorder %s473_s20, %s468_s12 }
  0x1c   : > { %p477_p12 = scmp.lt.u32.totalorder %s468_s12, %s678_s7 }
  0x1d   : > { %p472_p7 = pneg %p471_p6  ;;  %p476_p13 = por %p475_p10, %p474_p4 }
  0x1f   : > { %p478_p1 = por %p477_p12, %p476_p13 }
  0x21   : > { %p479_p2 = pnand %p478_p1, %p472_p7 }
  0x23   : > { %482 = shalt.err (!%p479_p2)
}
  0x24   : > { %s483_s24 = scalar_lea.vmem %s680_s9, 128  ;;  %s582_s29 = smov [#allocation3]  }
  0x25   : > { %p484_p3 = scmp.ne.s32.totalorder %s680_s9, %s483_s24  ;;  %s488_s30 = sshll.u32 %s582_s29, 4  ;;  %s489_s30 = int_to_ptr.vmem [resolvable:$false] %s488_s30 }
  0x26   : > { %s490_s4 = scalar_lea.vmem %s489_s30, 256  ;;  %p491_p9 = scmp.lt.s32.totalorder %s680_s9, %s489_s30 }
  0x27   : > { %p486_p6 = pnand %p484_p3, %p470_p5  ;;  %p492_p4 = scmp.lt.s32.totalorder %s490_s4, %s483_s24 }
  0x29   : > { %p487_p11 = pneg %p486_p6  ;;  %p493_p10 = por %p492_p4, %p491_p9 }
  0x2b   : > { %p494_p12 = pnand %p493_p10, %p487_p11 }
  0x2d   : > { %497 = shalt.err (!%p494_p12)
}
  0x2e   : > { %401 = dma.hbm_to_vmem [thread:$0]  (!%p684_p0), %s678_s7, 128, %s680_s9, %s155_s11  }
  0x2f   : > { %p795_p1 = scmp.lt.s32.totalorder %s580_s19, 3  ;;  %p796_p2 = scmp.ge.s32.totalorder %s580_s19, 1 }
  0x31   : > { %p174_p5 = pnand %p796_p2, %p795_p1 }
  0x32   : > { %s720_s5 = sand.u32 (!%p174_p5), 1, %s564_s15  }
  0x33   : > { %177 = sbr.rel (%p174_p5) target bundleno = 253 (0xfd), region = 32  ;;  %s383_s6 = sshll.u32 (!%p174_p5), %s720_s5, 3 }
  0x34   : > { %s180_s8 = scalar_lea.sflag (!%p174_p5), [#allocation4], %s720_s5  ;;  %s183_s12 = scalar_lea.vmem (!%p174_p5), [#allocation3], %s383_s6 }
  0x3a   : > { %551 = dma.done.wait (%p656_p8), %s180_s8, 128  }
  0x3b   : > { %553 = vsyncadd (%p656_p8), %s180_s8, 4294967168  ;;  %v583_v0 = vmov 0   ;;  %v210_v1 = vld [vmem:[%s786_s1] sm:$0xf]  ;;  %vm221_vm0 = vcmask 1043456   ;;  %s209_s10 = sld [smem:[#allocation2]]  ;;  %v257_v32 = vlaneseq }
  0x3c   : > { %458 = vset.pattern.permute.xlu0 %v583_v0  ;;  %v208_v2 = vld [vmem:[%s183_s12] sm:$0xff]  ;;  %v584_v30 = vmov 1966171168   ;;  %s384_s25 = sshll.u32 %s720_s5, 1  ;;  %s393_s11 = sshll.u32 %s572_s17, 5 }
  0x3d   : > { %213 = vperm.xlu0 %458, %v210_v1   ;;  %v217_v3 = vcombine.high %v208_v2, %v208_v2  ;;  %v255_v31 = vunpack.c.l.s4 %v584_v30  ;;  %v258_v34 = vshrl.u32 %v257_v32, 7  ;;  %s205_s13 = scalar_lea.vmem [#allocation6], %s384_s25  ;;  %vm271_vm1 = vcmp.lt.s32.totalorder %v257_v32, 256  ;;  %s736_s23 = scalar_lea.hbm %s788_s3, %s393_s11 }
  0x3e   : > { %s291_s2 = sshll.u32 %s205_s13, 4  ;;  %s275_s24 = scalar_lea.sflag [#allocation5], %s720_s5  ;;  %s738_s2 = int_to_ptr.vmem [resolvable:$true] %s291_s2 }
  0x3f   : > { %v256_v33 = vunpack.c.0.s8 %v255_v31  ;;  %s498_s29 = scalar_lea.vmem %s738_s2, 32  ;;  %p797_p9 = scmp.ne.s32.totalorder %s792_s26, 0 }
  0x40   : > { %p499_p8 = scmp.ne.s32.totalorder %s738_s2, %s498_s29  ;;  %s585_s17 = smov [#allocation6]  }
  0x41   : > { %v236_v19 = vstv %s209_s10  ;;  %v259_v36 = vsub.s32 %v256_v33, %v258_v34  ;;  %s502_s30 = sshll.u32 %s585_s17, 4  ;;  %s503_s30 = int_to_ptr.vmem [resolvable:$false] %s502_s30 }
  0x42   : > { %p500_p11 = pnand %p499_p8, %p797_p9  ;;  %s504_s4 = scalar_lea.vmem %s503_s30, 64 }
  0x43   : > { %p505_p7 = scmp.lt.s32.totalorder %s738_s2, %s503_s30  ;;  %p506_p13 = scmp.lt.s32.totalorder %s504_s4, %s498_s29 }
  0x44   : > { %p501_p0 = pneg %p500_p11 }
  0x45   : > { %p507_p3 = por %p506_p13, %p505_p7 }
  0x47   : > { %p508_p6 = pnand %p507_p3, %p501_p0 }
  0xbc   : > { %v214_v4 = vpop.permute.xlu0 %213 }
  0xbd   : > { %v219_v5 = vmul.f32 %v214_v4, %v208_v2  ;;  %v220_v6 = vmul.f32 %v217_v3, %v214_v4 }
  0xbf   : > { %v222_v7 = vsel %vm221_vm0, %v219_v5, 0.0  ;;  %v229_v8 = vsel %vm221_vm0, %v220_v6, 0.0 }
  0xc0   : > { %v223_v9 = vrot.slane %v222_v7, 4  ;;  %v230_v10 = vrot.slane %v229_v8, 4 }
  0xc2   : > { %v224_v11 = vadd.f32 %v223_v9, %v222_v7  ;;  %v231_v12 = vadd.f32 %v230_v10, %v229_v8 }
  0xc4   : > { %v225_v13 = vrot.slane %v224_v11, 2  ;;  %v232_v14 = vrot.slane %v231_v12, 2 }
  0xc6   : > { %v226_v15 = vadd.f32 %v225_v13, %v224_v11  ;;  %v233_v16 = vadd.f32 %v232_v14, %v231_v12 }
  0xc8   : > { %v227_v17 = vrot.slane %v226_v15, 1  ;;  %v234_v18 = vrot.slane %v233_v16, 1 }
  0xca   : > { %v228_v20 = vadd.f32 %v227_v17, %v226_v15  ;;  %v235_v21 = vadd.f32 %v234_v18, %v233_v16 }
  0xcc   : > { %v237_v22 = vadd.f32 %v236_v19, %v228_v20  ;;  %v238_v23 = vadd.f32 %v236_v19, %v235_v21 }
  0xce   : > { %v385_v24 = vmul.f32 -1.442695, %v237_v22  ;;  %v386_v25 = vmul.f32 -1.442695, %v238_v23 }
  0xd0   : > { %460 = vpow2.f32 %v385_v24 }
  0xd1   : > { %462 = vpow2.f32 %v386_v25 }
  0xda   : > { %v461_v26 = vpop.eup %460 }
  0xdb   : > { %v463_v27 = vpop.eup %462  ;;  %v245_v28 = vadd.f32 1.0, %v461_v26 }
  0xdc   : > { %v246_v29 = vadd.f32 1.0, %v463_v27 }
  0xdd   : > { %464 = vrcp.f32 %v245_v28 }
  0xde   : > { %466 = vrcp.f32 %v246_v29 }
  0xe7   : > { %v465_v35 = vpop.eup %464 }
  0xe8   : > { %v467_v37 = vpop.eup %466 }
  0xe9   : > { %v253_v38 = vcombine.low %v465_v35, %v467_v37 }
  0xeb   : > { %v260_v39 = vrot.slane %v253_v38, %v259_v36 }
  0xed   : > { %v267_v40 = vrot.slane %v260_v39, %v259_v36 }
  0xef   : > { %273 = vst.msk [vmem:[%s205_s13] sm:$0x3] %vm271_vm1, %v267_v40 }
  0xf0   : > { %511 = shalt.err (!%p508_p6)
}
  0xf1   : > { %s512_s5 = scalar_lea.hbm %s736_s23, 32  ;;  %s516_s12 = scalar_lea.hbm %s788_s3, 64 }
  0xf2   : > { %p513_p4 = scmp.ne.s32.totalorder %s736_s23, %s512_s5  ;;  %p517_p1 = scmp.lt.u32.totalorder %s736_s23, %s788_s3 }
  0xf3   : > { %p518_p2 = scmp.lt.u32.totalorder %s516_s12, %s512_s5  ;;  %p520_p8 = scmp.lt.u32.totalorder %s512_s5, %s736_s23 }
  0xf4   : > { %p514_p10 = pnand %p513_p4, %p797_p9 }
  0xf5   : > { %p519_p5 = por %p518_p2, %p517_p1 }
  0xf6   : > { %p515_p12 = pneg %p514_p10 }
  0xf7   : > { %p521_p11 = por %p520_p8, %p519_p5 }
  0xf9   : > { %p522_p0 = pnand %p521_p11, %p515_p12 }
  0xfb   : > { %525 = shalt.err (!%p522_p0)
}
  0xfc   : > { %396 = dma.vmem_to_hbm [thread:$0]  (%p797_p9), %s738_s2, 32, %s736_s23, %s275_s24  }
  0xfd PF: > { %s303_s10 = sand.u32 1, %s560_s14   ;;  %p798_p7 = scmp.ne.s32.totalorder %s793_s28, 0 }
  0xfe   : > { %p799_p13 = scmp.ge.s32.totalorder %s580_s19, 2  ;;  %s304_s25 = scalar_lea.sflag [#allocation5], %s303_s10 }
 0x100   : > { %p403_p3 = pnand %p799_p13, %p798_p7 }
 0x102   : > { %555 = dma.done.wait (!%p403_p3), %s304_s25, 32  }
 0x103   : > { %557 = vsyncadd (!%p403_p3), %s304_s25, 4294967264  ;;  %s20_s19 = sadd.s32 1, %s580_s19   ;;  %s800_s14 = smov %s564_s15 }
 0x104   : > { %p17_p6 = scmp.ge.s32.totalorder %s20_s19, 4   ;;  %s801_s15 = smov %s568_s16 }
 0x105   : > { %s802_s16 = smov %s665_s27  ;;  %s803_s17 = smov %s576_s18 }
 0x106   : > { %s804_s18 = smov %s806_s21  ;;  %19 = sbr.rel (!%p17_p6) target bundleno = 8 (0x8), region = 77 }
 0x10d   :  { %309 = vsyncpa [#allocation4], 1 }
 0x10e   :  { %311 = vsyncpa [#allocation4 + $0x1], 1 }
 0x10f   :  { %312 = vsyncpa [#allocation5], 1 }
 0x110   :  { %314 = vsyncpa [#allocation5 + $0x1], 1 }

</bundles_post_ra>
